<compile_context>
chip_gen: v7x
topology: tpu7x:2x2x1
jax: 0.10.0
libtpu: 0.0.40
codegen_flags: <defaults>
</compile_context>

<pallas_src>
import functools

import jax
import jax.numpy as jnp
from jax.experimental import pallas as pl
from jax.experimental.pallas import tpu as pltpu


def _round_up(x, m):
    return (x + m - 1) // m * m


# ---------------------------------------------------------------------------
# Kernels (weight is pre-transposed to (K, N) -> plain MXU contraction).
# ---------------------------------------------------------------------------

def _linear_kernel_single(x_ref, wt_ref, b_ref, o_ref, *, compute_dtype):
    lhs = x_ref[...]
    rhs = wt_ref[...]
    if compute_dtype is not None:
        lhs = lhs.astype(compute_dtype)
        rhs = rhs.astype(compute_dtype)
    acc = jnp.dot(lhs, rhs, preferred_element_type=jnp.float32)
    o_ref[...] = (acc + b_ref[...]).astype(o_ref.dtype)


def _linear_kernel_tiled_f32(x_ref, wt_ref, b_ref, o_ref, *, compute_dtype):
    """f32 output: accumulate directly into the resident output block."""
    k = pl.program_id(2)

    @pl.when(k == 0)
    def _():
        o_ref[...] = jnp.broadcast_to(b_ref[...], o_ref.shape)

    lhs = x_ref[...]
    rhs = wt_ref[...]
    if compute_dtype is not None:
        lhs = lhs.astype(compute_dtype)
        rhs = rhs.astype(compute_dtype)
    o_ref[...] += jnp.dot(lhs, rhs, preferred_element_type=jnp.float32)


def _linear_kernel_tiled_acc(x_ref, wt_ref, b_ref, o_ref, acc_ref, *,
                             compute_dtype):
    """Low-precision output: f32 VMEM accumulator, cast once at the end."""
    k = pl.program_id(2)

    @pl.when(k == 0)
    def _():
        acc_ref[...] = jnp.zeros_like(acc_ref)

    lhs = x_ref[...]
    rhs = wt_ref[...]
    if compute_dtype is not None:
        lhs = lhs.astype(compute_dtype)
        rhs = rhs.astype(compute_dtype)
    acc_ref[...] += jnp.dot(lhs, rhs, preferred_element_type=jnp.float32)

    @pl.when(k == pl.num_programs(2) - 1)
    def _():
        o_ref[...] = (acc_ref[...] + b_ref[...]).astype(o_ref.dtype)


# ---------------------------------------------------------------------------
# One-time parameter prep (call at model init, NOT per forward).
# ---------------------------------------------------------------------------

def prepare_linear_params(weight, bias, *, param_dtype=None):
    """Transpose PyTorch (N, K) weight to (K, N), pad N to a multiple of 128,
    reshape bias to (1, Np).  Optionally pre-cast the weight (e.g. bf16)."""
    N, K = weight.shape
    Np = _round_up(N, 128)
    wt = weight.T                                   # (K, N)
    if Np != N:
        wt = jnp.pad(wt, ((0, 0), (0, Np - N)))
        bias = jnp.pad(bias, (0, Np - N))
    if param_dtype is not None:
        wt = wt.astype(param_dtype)
    b2 = bias.reshape(1, Np).astype(jnp.float32)
    return wt, b2, N


# ---------------------------------------------------------------------------
# Forward
# ---------------------------------------------------------------------------

def linear_forward_prepped(x, wt, b2, n_out, *, tm=512, tn=512, tk=1024,
                           single_block_bytes=2 << 20,
                           vmem_limit_bytes=48 << 20,
                           compute_dtype=None):
    """out = x @ wt + b  with wt already in (K, Np) layout, Np % 128 == 0."""
    orig_shape = x.shape
    K = orig_shape[-1]
    Kw, Np = wt.shape
    assert Kw == K, "weight inner dim mismatch"
    x2 = x.reshape(-1, K)
    M = x2.shape[0]
    out_dtype = x.dtype
    item = jnp.dtype(x.dtype).itemsize

    total_bytes = (M * K + K * Np + Np + M * Np) * item

    # ---------------- small-problem single-block path ----------------
    if total_bytes <= single_block_bytes:
        kern = functools.partial(_linear_kernel_single,
                                 compute_dtype=compute_dtype)
        out = pl.pallas_call(
            kern,
            out_shape=jax.ShapeDtypeStruct((M, Np), out_dtype),
            in_specs=[
                pl.BlockSpec(memory_space=pltpu.MemorySpace.VMEM),
                pl.BlockSpec(memory_space=pltpu.MemorySpace.VMEM),
                pl.BlockSpec(memory_space=pltpu.MemorySpace.VMEM),
            ],
            out_specs=pl.BlockSpec(memory_space=pltpu.MemorySpace.VMEM),
        )(x2, wt, b2)
        return out[:, :n_out].reshape(*orig_shape[:-1], n_out)

    # ---------------- tiled, pipelined path ----------------
    # Sanitize tile requests to hardware-friendly multiples.
    tm = max(8, tm // 8 * 8)
    tn = max(128, tn // 128 * 128)
    tk = max(128, tk // 128 * 128)

    # K (contraction) must tile exactly: prefer a multiple-of-128 divisor of K;
    # only pad K (one-time) if no such divisor exists.
    if K <= tk:
        tk_sel, Kp = K, K
    else:
        tk_sel, Kp = 0, K
        for t in range(tk, 127, -128):
            if K % t == 0:
                tk_sel = t
                break
        if tk_sel == 0:
            # TODO(synk): a masked K-tail block would avoid this activation pad.
            tk_sel = tk
            Kp = _round_up(K, tk)

    # M: no activation pad — partial last M block is masked on writeback.
    tm_sel = M if M <= tm else tm
    # N: Np is a multiple of 128; pick the largest 128-multiple divisor.
    tn_sel = min(tn, Np)
    while Np % tn_sel != 0:
        tn_sel -= 128

    gm = pl.cdiv(M, tm_sel)
    gn = Np // tn_sel
    gk = Kp // tk_sel

    # v7x guard: avoid a grid with no parallel extent when K is gridded.
    if gm * gn == 1 and gk > 1 and Np >= 256:
        tn_sel = max(128, (Np // 2) // 128 * 128)
        while Np % tn_sel != 0:
            tn_sel -= 128
        gn = Np // tn_sel

    if Kp != K:
        x2 = jnp.pad(x2, ((0, 0), (0, Kp - K)))
        wt = jnp.pad(wt, ((0, Kp - K), (0, 0)))

    grid = (gm, gn, gk)
    cost = pl.CostEstimate(
        flops=2 * M * Np * Kp,
        transcendentals=0,
        bytes_accessed=(M * Kp + Kp * Np + M * Np + Np) * item)

    in_specs = [
        pl.BlockSpec((tm_sel, tk_sel), lambda i, j, k: (i, k)),
        pl.BlockSpec((tk_sel, tn_sel), lambda i, j, k: (k, j)),
        pl.BlockSpec((1, tn_sel), lambda i, j, k: (0, j)),
    ]
    out_spec = pl.BlockSpec((tm_sel, tn_sel), lambda i, j, k: (i, j))

    if jnp.dtype(out_dtype) == jnp.float32:
        kern = functools.partial(_linear_kernel_tiled_f32,
                                 compute_dtype=compute_dtype)
        scratch = []
    else:
        kern = functools.partial(_linear_kernel_tiled_acc,
                                 compute_dtype=compute_dtype)
        scratch = [pltpu.VMEM((tm_sel, tn_sel), jnp.float32)]

    out = pl.pallas_call(
        kern,
        out_shape=jax.ShapeDtypeStruct((M, Np), out_dtype),
        grid_spec=pltpu.PrefetchScalarGridSpec(
            num_scalar_prefetch=0,
            grid=grid,
            in_specs=in_specs,
            out_specs=out_spec,
            scratch_shapes=scratch),
        compiler_params=pltpu.CompilerParams(
            dimension_semantics=("parallel", "parallel", "arbitrary"),
            vmem_limit_bytes=vmem_limit_bytes),
        cost_estimate=cost,
    )(x2, wt, b2)

    return out[:, :n_out].reshape(*orig_shape[:-1], n_out)


def linear_forward(x, weight, bias, **kwargs):
    """nn.Linear forward with PyTorch-layout (N, K) weight.
    Prefer prepare_linear_params() once + linear_forward_prepped() per call."""
    wt, b2, n_out = prepare_linear_params(weight, bias)
    return linear_forward_prepped(x, wt, b2, n_out, **kwargs)


if __name__ == "__main__":
    key = jax.random.PRNGKey(0)
    keys = jax.random.split(key, 12)

    # --- Small shapes implied by the module (single-block path) -------------
    batch, input_dim, output_dim = 8, 32, 16
    bound = 1.0 / (input_dim ** 0.5)
    x = jax.random.normal(keys[0], (batch, input_dim), dtype=jnp.float32)
    weight = jax.random.uniform(keys[1], (output_dim, input_dim),
                                minval=-bound, maxval=bound, dtype=jnp.float32)
    bias = jax.random.uniform(keys[2], (output_dim,),
                              minval=-bound, maxval=bound, dtype=jnp.float32)

    out = jax.block_until_ready(linear_forward(x, weight, bias))
    ref = x @ weight.T + bias
    assert out.shape == (batch, output_dim)
    assert jnp.allclose(out, ref, atol=1e-5, rtol=1e-5)

    # --- Larger shapes: tiled pipeline, params prepared once ("init") -------
    M2, K2, N2 = 1024, 2048, 1024
    bound2 = 1.0 / (K2 ** 0.5)
    xb = jax.random.normal(keys[3], (M2, K2), dtype=jnp.float32)
    wb = jax.random.uniform(keys[4], (N2, K2), minval=-bound2, maxval=bound2,
                            dtype=jnp.float32)
    bb = jax.random.uniform(keys[5], (N2,), minval=-bound2, maxval=bound2,
                            dtype=jnp.float32)
    wt2, b2_2, nout2 = prepare_linear_params(wb, bb)      # one-time prep
    out2 = jax.block_until_ready(linear_forward_prepped(xb, wt2, b2_2, nout2))
    ref2 = xb @ wb.T + bb
    assert out2.shape == (M2, N2)
    assert jnp.allclose(out2, ref2, atol=1e-3, rtol=1e-3)

    # --- Non-aligned M/N: exercises masked M-tail (no activation pad) -------
    M3, K3, N3 = 300, 256, 200
    bound3 = 1.0 / (K3 ** 0.5)
    x3 = jax.random.normal(keys[6], (M3, K3), dtype=jnp.float32)
    w3 = jax.random.uniform(keys[7], (N3, K3), minval=-bound3, maxval=bound3,
                            dtype=jnp.float32)
    b3 = jax.random.uniform(keys[8], (N3,), minval=-bound3, maxval=bound3,
                            dtype=jnp.float32)
    wt3, b3_2, nout3 = prepare_linear_params(w3, b3)
    out3 = jax.block_until_ready(
        linear_forward_prepped(x3, wt3, b3_2, nout3, tm=128,
                               single_block_bytes=0))
    ref3 = x3 @ w3.T + b3
    assert out3.shape == (M3, N3)
    assert jnp.allclose(out3, ref3, atol=1e-4, rtol=1e-4)

    # --- Deep-K, skinny M/N: exercises the degenerate-grid guard ------------
    M4, K4, N4 = 8, 4096, 256
    bound4 = 1.0 / (K4 ** 0.5)
    x4 = jax.random.normal(keys[9], (M4, K4), dtype=jnp.float32)
    w4 = jax.random.uniform(keys[10], (N4, K4), minval=-bound4, maxval=bound4,
                            dtype=jnp.float32)
    b4 = jax.random.uniform(keys[11], (N4,), minval=-bound4, maxval=bound4,
                            dtype=jnp.float32)
    wt4, b4_2, nout4 = prepare_linear_params(w4, b4)
    out4 = jax.block_until_ready(
        linear_forward_prepped(x4, wt4, b4_2, nout4, single_block_bytes=0))
    ref4 = x4 @ w4.T + b4
    assert out4.shape == (M4, N4)
    assert jnp.allclose(out4, ref4, atol=1e-3, rtol=1e-3)

    # --- Optional bf16 compute mode (f32 accumulation), loose tolerance -----
    out5 = jax.block_until_ready(
        linear_forward_prepped(xb, wt2, b2_2, nout2,
                               compute_dtype=jnp.bfloat16))
    assert out5.shape == (M2, N2)
    assert float(jnp.max(jnp.abs(out5 - ref2))) < 0.1

    print("KERNEL_OK")
</pallas_src>

<mosaic_0001>
module attributes {stable_mosaic.version = 11 : i64} {
  func.func @_linear_kernel_single(%arg0: memref<8x32xf32, #tpu.memory_space<vmem>>, %arg1: memref<32x128xf32, #tpu.memory_space<vmem>>, %arg2: memref<1x128xf32, #tpu.memory_space<vmem>>, %arg3: memref<8x128xf32, #tpu.memory_space<vmem>>) attributes {dimension_semantics = [], scalar_prefetch = 0 : i64, scratch_operands = 0 : i64, tpu.core_type = #tpu.core_type<tc>} {
    %c0 = arith.constant 0 : index
    %c0_0 = arith.constant 0 : index
    %0 = vector.load %arg0[%c0, %c0_0] : memref<8x32xf32, #tpu.memory_space<vmem>>, vector<8x32xf32>
    %c0_1 = arith.constant 0 : index
    %c0_2 = arith.constant 0 : index
    %1 = vector.load %arg1[%c0_1, %c0_2] : memref<32x128xf32, #tpu.memory_space<vmem>>, vector<32x128xf32>
    %cst = arith.constant dense<0.000000e+00> : vector<8x128xf32>
    %2 = tpu.matmul %0, %1, %cst {dimension_numbers = #tpu.dot_dimension_numbers<[1], [0], [0], [1], [0, 0, 1, 1], [], []>} : vector<8x32xf32>, vector<32x128xf32>, vector<8x128xf32> -> vector<8x128xf32>
    %c0_3 = arith.constant 0 : index
    %c0_4 = arith.constant 0 : index
    %3 = vector.load %arg2[%c0_3, %c0_4] : memref<1x128xf32, #tpu.memory_space<vmem>>, vector<1x128xf32>
    %4 = vector.broadcast %3 : vector<1x128xf32> to vector<8x128xf32>
    %5 = arith.addf %2, %4 : vector<8x128xf32>
    %c0_5 = arith.constant 0 : index
    %c0_6 = arith.constant 0 : index
    %6 = vector.load %arg3[%c0_5, %c0_6] : memref<8x128xf32, #tpu.memory_space<vmem>>, vector<8x128xf32>
    tpu.vector_store %arg3[%c0_5, %c0_6], %5 {strides = array<i32>} : memref<8x128xf32, #tpu.memory_space<vmem>>, vector<8x128xf32>,
    return
  }
}

</mosaic_0001>

<bundles_post_ra>
// kernel: tpu_custom_call.1
= control target key start
LH: loop header
LB: loop body
LE: loop exit
PB: predicated region body
PF: predicated region fallthrough
CT: control target
= control target key end

     0   :  { %8 = vsyncpa [#allocation3], 0  ;;  %s322_s0 = inlined_call_operand.hbm [shape: f32[8,32], index: 0, kind: input, shape index: {}]   ;;  %s323_s1 = inlined_call_operand.hbm [shape: f32[32,128], index: 1, kind: input, shape index: {}]   ;;  %s324_s2 = inlined_call_operand.vmem [shape: f32[1,128], index: 2, kind: input, shape index: {}]   ;;  %s325_s3 = inlined_call_operand.hbm [shape: f32[8,128], index: 3, kind: output, shape index: {}]  }
   0x1   :  { %9 = vsyncpa [#allocation6], 0 }
   0x2   :  { %10 = vsyncpa [#allocation4], 0  ;;  %s248_s12 = smov [#allocation2]   ;;  %s249_s14 = smov [#allocation5]  }
   0x3   :  { %s17_s13 = sshll.u32 %s248_s12, 4  ;;  %s26_s15 = sshll.u32 %s249_s14, 4  ;;  %s18_s13 = int_to_ptr.vmem [resolvable:$true] %s17_s13  ;;  %s276_s15 = int_to_ptr.vmem [resolvable:$true] %s26_s15 }
   0x4   :  { %s176_s18 = scalar_lea.hbm %s322_s0, 128 }
   0x5   :  { %p177_p0 = scmp.ne.s32.totalorder %s322_s0, %s176_s18  ;;  %p180_p1 = scmp.lt.u32.totalorder %s176_s18, %s322_s0 }
   0x7   :  { %p182_p2 = pnand %p180_p1, %p177_p0 }
   0x9   :  { %185 = shalt.err (!%p182_p2)
}
   0xa   :  { %s186_s23 = scalar_lea.vmem %s18_s13, 128  ;;  %p191_p4 = scmp.lt.s32.totalorder %s18_s13, %s18_s13 }
   0xb   :  { %p187_p3 = scmp.ne.s32.totalorder %s18_s13, %s186_s23  ;;  %p192_p5 = scmp.lt.s32.totalorder %s186_s23, %s186_s23 }
   0xd   :  { %p193_p6 = por %p192_p5, %p191_p4 }
   0xf   :  { %p194_p7 = pnand %p193_p6, %p187_p3 }
  0x11   :  { %197 = shalt.err (!%p194_p7)
}
  0x12   :  { %20 = dma.hbm_to_vmem [thread:$0]  %s322_s0, 128, %s18_s13, [#allocation3]  }
  0x13   :  { %s198_s28 = scalar_lea.hbm %s323_s1, 512 }
  0x14   :  { %p199_p8 = scmp.ne.s32.totalorder %s323_s1, %s198_s28  ;;  %p202_p9 = scmp.lt.u32.totalorder %s198_s28, %s323_s1 }
  0x16   :  { %p204_p10 = pnand %p202_p9, %p199_p8 }
  0x18   :  { %207 = shalt.err (!%p204_p10)
}
  0x19   :  { %s208_s6 = scalar_lea.vmem %s276_s15, 512  ;;  %p213_p12 = scmp.lt.s32.totalorder %s276_s15, %s276_s15 }
  0x1a   :  { %p209_p11 = scmp.ne.s32.totalorder %s276_s15, %s208_s6  ;;  %p214_p13 = scmp.lt.s32.totalorder %s208_s6, %s208_s6 }
  0x1c   :  { %p215_p0 = por %p214_p13, %p213_p12 }
  0x1e   :  { %p216_p1 = pnand %p215_p0, %p209_p11 }
  0x20   :  { %219 = shalt.err (!%p216_p1)
}
  0x21   :  { %s250_s0 = smov 128   ;;  %s251_s7 = smov 8  }
  0x22   :  { %32 = dma.hbm_to_vmem [thread:$0]  %s323_s1, 512, %s276_s15, [#allocation6], %s250_s0, %s250_s0, %s251_s7  }
  0x23   :  { %242 = dma.done.wait [#allocation3], 128  }
  0x24   :  { %243 = vsyncadd [#allocation3], 4294967168 }
  0x25   :  { %244 = dma.done.wait [#allocation6], 512  }
  0x26   :  { %245 = vsyncadd [#allocation6], 4294966784  ;;  %v252_v0 = vmov 0.0|0.0   ;;  %vm253_vm0 = vmmov 0   ;;  %v254_v1 = vmov 0.0   ;;  %v42_v2 = vld [vmem:[#allocation5] sm:$0xff] }
  0x27   :  { %162 = vmatprep.subr.bf16.mxu0 %v252_v0  ;;  %159 = vmatprep.mubr.msk.f32.mxu0 %vm253_vm0, %v254_v1  ;;  %v43_v3 = vld [vmem:[#allocation5 + $0x8] sm:$0xff]  ;;  %v44_v4 = vld [vmem:[#allocation5 + $0x10] sm:$0xff]  ;;  %v45_v6 = vld [vmem:[#allocation5 + $0x18] sm:$0xff]  ;;  %vm53_vm1 = vcmask 261120   ;;  %s255_s11 = smov [#allocation7]  }
  0x28   :  { %v163_v5 = vpack.c.bf16 %v43_v3, %v42_v2  ;;  %v166_v7 = vpack.c.bf16 %v45_v6, %v44_v4  ;;  %v41_v8 = vld [vmem:[#allocation2] sm:$0xff]  ;;  %s134_s12 = sshll.u32 %s255_s11, 4  ;;  %s135_s12 = int_to_ptr.vmem [resolvable:$true] %s134_s12 }
  0x29   :  { %v144_v9 = vld [vmem:[%s324_s2] ss:$0 sm:$0xff]  ;;  %s220_s13 = scalar_lea.vmem %s135_s12, 128  ;;  %p225_p3 = scmp.lt.s32.totalorder %s135_s12, %s135_s12 }
  0x2a   :  { %164 = vmatpush3.bf16.msra.mxu0 %v163_v5  ;;  %p221_p2 = scmp.ne.s32.totalorder %s135_s12, %s220_s13  ;;  %p226_p4 = scmp.lt.s32.totalorder %s220_s13, %s220_s13 }
  0x2b   :  { %165 = vmatprep.subr.bf16.mxu0 %v252_v0 }
  0x2c   :  { %p227_p5 = por %p226_p4, %p225_p3 }
  0x2e   :  { %167 = vmatpush3.bf16.msra.mxu0 %v166_v7  ;;  %p228_p6 = pnand %p227_p5, %p221_p2 }
  0x31   :  { %160 = vmatmul.mubr.msk.f32.vlgmr.msra.gmra.mrb[0].mxu0 %vm53_vm1, %v41_v8 }
 0x104   :  { %v123_v10 = vpop.f32.mrb[0].mxu0 }
 0x105   :  { %v124_v11 = vadd.f32 %v144_v9, %v123_v10  ;;  %v161_v12 = vpop.f32.mrb[1].mxu0 }
 0x107   :  { %127 = vst [vmem:[#allocation7] sm:$0xff] %v124_v11 }
 0x108   :  { %231 = shalt.err (!%p228_p6)
}
 0x109   :  { %s232_s16 = scalar_lea.hbm %s325_s3, 128 }
 0x10a   :  { %p233_p7 = scmp.ne.s32.totalorder %s325_s3, %s232_s16  ;;  %p236_p8 = scmp.lt.u32.totalorder %s232_s16, %s325_s3 }
 0x10c   :  { %p238_p9 = pnand %p236_p8, %p233_p7 }
 0x10e   :  { %241 = shalt.err (!%p238_p9)
}
 0x10f   :  { %137 = dma.vmem_to_hbm [thread:$0]  %s135_s12, 128, %s325_s3, [#allocation4]  }
 0x110   :  { %246 = dma.done.wait [#allocation4], 128  }
 0x111   :  { %247 = vsyncadd [#allocation4], 4294967168 }
 0x112   :  { %141 = vsyncpa [#allocation3], 1 }
 0x113   :  { %142 = vsyncpa [#allocation6], 1 }
 0x114   :  { %143 = vsyncpa [#allocation4], 1 }

</bundles_post_ra>
